<compile_context>
chip_gen: v5e
topology: v5e:2x2
jax: 0.10.0
libtpu: 0.0.40
codegen_flags: <defaults>
</compile_context>

<pallas_src>
import math

import jax
import jax.numpy as jnp
from jax.experimental import pallas as pl
from jax.experimental.pallas import tpu as pltpu


_LANE = 128        # lane width: output tiles are multiples of this
_TS_CAP = 8192     # spatial tile cap (fits default scoped VMEM on v5e/v6e/v7x)


def _round_up(x, m):
    return (x + m - 1) // m * m


# ---------------------------------------------------------------------------
# Pallas kernel: one (batch, spatial-tile) step of the patch-embedding conv,
# expressed as a single bf16 MXU matmul with f32 accumulation + f32 bias add.
#   p_ref : (Kdim, TS)     bf16 im2col patches for this tile  (Kdim = C_in*K*K)
#   w_ref : (C_out, Kdim)  bf16 reshaped conv weight (VMEM-resident)
#   b_ref : (C_out, 1)     f32 bias (VMEM-resident)
#   o_ref : (C_out, TS)    output tile (x.dtype), lane-dense along spatial dim
# ---------------------------------------------------------------------------
def patch_embed_kernel(p_ref, w_ref, b_ref, o_ref):
    acc = jnp.dot(w_ref[...], p_ref[...], preferred_element_type=jnp.float32)
    o_ref[...] = (acc + b_ref[...]).astype(o_ref.dtype)


# ---------------------------------------------------------------------------
# Wrapper: full PatchEmbed forward (reflect pad + strided conv).
# ---------------------------------------------------------------------------
def patch_embed(x, weight, bias, *, patch_size, kernel_size=None,
                compute_dtype=jnp.bfloat16):
    if kernel_size is None:
        kernel_size = patch_size
    K = kernel_size
    stride = patch_size
    pad = (K - stride + 1) // 2

    B, C_in, H, W = x.shape
    C_out = weight.shape[0]
    out_dtype = x.dtype

    if pad > 0:
        x = jnp.pad(x, ((0, 0), (0, 0), (pad, pad), (pad, pad)), mode="reflect")
    Hp, Wp = x.shape[2], x.shape[3]
    Ho = (Hp - K) // stride + 1
    Wo = (Wp - K) // stride + 1
    S = Ho * Wo
    Kdim = C_in * K * K

    # im2col in (C_in-major, (kh,kw)-minor) order, matching
    # weight.reshape(C_out, C_in*K*K).  Emitted directly in the bf16 compute
    # dtype so the materialized patches array is half-width in HBM.
    cols = []
    for kh in range(K):
        for kw in range(K):
            cols.append(
                x[:, :, kh:kh + (Ho - 1) * stride + 1:stride,
                        kw:kw + (Wo - 1) * stride + 1:stride]
            )
    patches = jnp.stack(cols, axis=2).reshape(B, Kdim, S).astype(compute_dtype)

    # Spatial tiling: lane-aligned, capped at _TS_CAP, and split into >= 2
    # tiles when B == 1 so both v7x TensorCores get parallel grid steps.
    S_lane = _round_up(S, _LANE)
    n_tiles = max(1, math.ceil(S_lane / _TS_CAP))
    if B == 1 and n_tiles == 1 and S_lane >= 2 * _LANE:
        n_tiles = 2
    TS = _round_up(math.ceil(S_lane / n_tiles), _LANE)
    S_pad = TS * n_tiles
    if S_pad != S:
        patches = jnp.pad(patches, ((0, 0), (0, 0), (0, S_pad - S)))

    w2d = weight.reshape(C_out, Kdim).astype(compute_dtype)   # (C_out, Kdim)
    b2d = bias.reshape(C_out, 1).astype(jnp.float32)          # (C_out, 1)

    grid = (B, n_tiles)
    out_p = pl.pallas_call(
        patch_embed_kernel,
        out_shape=jax.ShapeDtypeStruct((B, C_out, S_pad), out_dtype),
        grid_spec=pltpu.PrefetchScalarGridSpec(
            num_scalar_prefetch=0,
            grid=grid,
            in_specs=[
                pl.BlockSpec((None, Kdim, TS), lambda b, s: (b, 0, s)),
                pl.BlockSpec((C_out, Kdim), lambda b, s: (0, 0)),   # resident
                pl.BlockSpec((C_out, 1), lambda b, s: (0, 0)),      # resident
            ],
            out_specs=pl.BlockSpec((None, C_out, TS), lambda b, s: (b, 0, s)),
        ),
        compiler_params=pltpu.CompilerParams(
            dimension_semantics=("parallel", "parallel")
        ),
    )(patches, w2d, b2d)

    # Drop spatial pad columns; free reshape to PyTorch NCHW layout.
    out = out_p[:, :, :S] if S_pad != S else out_p
    return out.reshape(B, C_out, Ho, Wo)


# ---------------------------------------------------------------------------
# Pure-JAX reference (XLA conv, f32) for a sanity check.
# ---------------------------------------------------------------------------
def patch_embed_ref(x, weight, bias, *, patch_size, kernel_size=None):
    if kernel_size is None:
        kernel_size = patch_size
    pad = (kernel_size - patch_size + 1) // 2
    if pad > 0:
        x = jnp.pad(x, ((0, 0), (0, 0), (pad, pad), (pad, pad)), mode="reflect")
    out = jax.lax.conv_general_dilated(
        x, weight,
        window_strides=(patch_size, patch_size),
        padding="VALID",
        dimension_numbers=("NCHW", "OIHW", "NCHW"),
    )
    return out + bias[None, :, None, None]


if __name__ == "__main__":
    key = jax.random.PRNGKey(0)

    # ---- config 1: module defaults (kernel_size == patch_size, no padding) --
    B, C_in, H, W = 2, 3, 16, 16
    patch_size, embed_dim = 4, 96
    K1 = patch_size
    k1, k2, k3, key = jax.random.split(key, 4)
    x1 = jax.random.normal(k1, (B, C_in, H, W), dtype=jnp.float32)
    w1 = jax.random.normal(k2, (embed_dim, C_in, K1, K1), dtype=jnp.float32) \
        * (1.0 / math.sqrt(C_in * K1 * K1))
    b1 = jax.random.normal(k3, (embed_dim,), dtype=jnp.float32) * 0.02

    out1 = jax.block_until_ready(
        patch_embed(x1, w1, b1, patch_size=patch_size, kernel_size=None)
    )
    ref1 = patch_embed_ref(x1, w1, b1, patch_size=patch_size, kernel_size=None)
    assert out1.shape == (B, embed_dim, H // patch_size, W // patch_size)
    assert out1.dtype == x1.dtype
    # bf16 MXU inputs with f32 accumulation: loosened tolerance vs f32 ref.
    assert jnp.allclose(out1, ref1, atol=6e-2, rtol=6e-2), "mismatch (default cfg)"

    # ---- config 2: overlapping kernel with reflect padding ------------------
    B2, C2, H2, W2 = 2, 4, 16, 16
    patch2, embed2, ksz2 = 2, 32, 3
    k4, k5, k6, key = jax.random.split(key, 4)
    x2 = jax.random.normal(k4, (B2, C2, H2, W2), dtype=jnp.float32)
    w2 = jax.random.normal(k5, (embed2, C2, ksz2, ksz2), dtype=jnp.float32) \
        * (1.0 / math.sqrt(C2 * ksz2 * ksz2))
    b2 = jax.random.normal(k6, (embed2,), dtype=jnp.float32) * 0.02

    out2 = jax.block_until_ready(
        patch_embed(x2, w2, b2, patch_size=patch2, kernel_size=ksz2)
    )
    ref2 = patch_embed_ref(x2, w2, b2, patch_size=patch2, kernel_size=ksz2)
    assert out2.shape == (B2, embed2, H2 // patch2, W2 // patch2)
    assert out2.dtype == x2.dtype
    assert jnp.allclose(out2, ref2, atol=6e-2, rtol=6e-2), "mismatch (reflect cfg)"

    print("KERNEL_OK")
</pallas_src>

<mosaic_0001>
module attributes {stable_mosaic.version = 11 : i64} {
  func.func @patch_embed_kernel(%arg0: i32, %arg1: i32, %arg2: memref<1x48x128xbf16, #tpu.memory_space<vmem>>, %arg3: memref<96x48xbf16, #tpu.memory_space<vmem>>, %arg4: memref<96x1xf32, #tpu.memory_space<vmem>>, %arg5: memref<1x96x128xf32, #tpu.memory_space<vmem>>) attributes {dimension_semantics = [#tpu.dimension_semantics<parallel>, #tpu.dimension_semantics<parallel>], iteration_bounds = array<i64: 2, 1>, scalar_prefetch = 0 : i64, scratch_operands = 0 : i64, tpu.core_type = #tpu.core_type<tc>, window_params = [{transform_indices = @transform_0, window_bounds = array<i64: 1, 48, 128>}, {pipeline_mode = #tpu.pipeline_mode<synchronous>, transform_indices = @transform_1, window_bounds = array<i64: 96, 48>}, {pipeline_mode = #tpu.pipeline_mode<synchronous>, transform_indices = @transform_2, window_bounds = array<i64: 96, 1>}, {transform_indices = @transform_3, window_bounds = array<i64: 1, 96, 128>}]} {
    %c0 = arith.constant 0 : index
    %c0_0 = arith.constant 0 : index
    %0 = vector.load %arg3[%c0, %c0_0] : memref<96x48xbf16, #tpu.memory_space<vmem>>, vector<96x48xbf16>
    %c0_1 = arith.constant 0 : index
    %c0_2 = arith.constant 0 : index
    %c0_3 = arith.constant 0 : index
    %1 = vector.load %arg2[%c0_1, %c0_2, %c0_3] : memref<1x48x128xbf16, #tpu.memory_space<vmem>>, vector<1x48x128xbf16>
    %2 = vector.shape_cast %1 : vector<1x48x128xbf16> to vector<48x128xbf16>
    %cst = arith.constant dense<0.000000e+00> : vector<96x128xf32>
    %3 = tpu.matmul %0, %2, %cst {dimension_numbers = #tpu.dot_dimension_numbers<[1], [0], [0], [1], [0, 0, 1, 1], [], []>} : vector<96x48xbf16>, vector<48x128xbf16>, vector<96x128xf32> -> vector<96x128xf32>
    %c0_4 = arith.constant 0 : index
    %c0_5 = arith.constant 0 : index
    %4 = vector.load %arg4[%c0_4, %c0_5] : memref<96x1xf32, #tpu.memory_space<vmem>>, vector<96x1xf32>
    %5 = vector.broadcast %4 : vector<96x1xf32> to vector<96x128xf32>
    %6 = arith.addf %3, %5 : vector<96x128xf32>
    %c0_6 = arith.constant 0 : index
    %c0_7 = arith.constant 0 : index
    %c0_8 = arith.constant 0 : index
    %7 = vector.load %arg5[%c0_6, %c0_7, %c0_8] : memref<1x96x128xf32, #tpu.memory_space<vmem>>, vector<1x96x128xf32>
    %8 = vector.shape_cast %7 : vector<1x96x128xf32> to vector<96x128xf32>
    %9 = vector.shape_cast %6 : vector<96x128xf32> to vector<1x96x128xf32>
    tpu.vector_store %arg5[%c0_6, %c0_7, %c0_8], %9 {strides = array<i32>} : memref<1x96x128xf32, #tpu.memory_space<vmem>>, vector<1x96x128xf32>,
    return
  }
  func.func @transform_0(%arg0: i32, %arg1: i32) -> (i32, i32, i32) {
    %c0_i32 = arith.constant 0 : i32
    %c0_i32_0 = arith.constant 0 : i32
    return %arg0, %c0_i32, %arg1 : i32, i32, i32
  }
  func.func @transform_1(%arg0: i32, %arg1: i32) -> (i32, i32) {
    %c0_i32 = arith.constant 0 : i32
    %c0_i32_0 = arith.constant 0 : i32
    %c0_i32_1 = arith.constant 0 : i32
    return %c0_i32, %c0_i32_0 : i32, i32
  }
  func.func @transform_2(%arg0: i32, %arg1: i32) -> (i32, i32) {
    %c0_i32 = arith.constant 0 : i32
    %c0_i32_0 = arith.constant 0 : i32
    %c0_i32_1 = arith.constant 0 : i32
    return %c0_i32, %c0_i32_0 : i32, i32
  }
  func.func @transform_3(%arg0: i32, %arg1: i32) -> (i32, i32, i32) {
    %c0_i32 = arith.constant 0 : i32
    %c0_i32_0 = arith.constant 0 : i32
    return %arg0, %c0_i32, %arg1 : i32, i32, i32
  }
}

</mosaic_0001>

<bundles_post_ra>
// kernel: tpu_custom_call.1
= control target key start
LH: loop header
LB: loop body
LE: loop exit
PB: predicated region body
PF: predicated region fallthrough
CT: control target
= control target key end

     0   :  { %8 = vsyncpa [#allocation3], 0  ;;  %s910_s0 = inlined_call_operand.vmem [shape: bf16[2,48,128], index: 0, kind: input, shape index: {}]   ;;  %s911_s1 = inlined_call_operand.vmem [shape: bf16[96,48], index: 1, kind: input, shape index: {}]   ;;  %s912_s2 = inlined_call_operand.vmem [shape: f32[96,1], index: 2, kind: input, shape index: {}]   ;;  %s913_s3 = inlined_call_operand.hbm [shape: f32[2,96,128], index: 3, kind: output, shape index: {}]  }
   0x1   :  { %10 = vsyncpa [#allocation3 + $0x1], 0  ;;  %s734_s12 = smov 0   ;;  %s736_s13 = smov 0  }
   0x2   :  { %s738_s14 = smov 0   ;;  %s740_s15 = smov 0  }
   0x3   :  { %s742_s16 = smov 0   ;;  %s744_s17 = smov 0  }
   0x4 LB: > { %s498_s18 = sadd.s32 4294967295, %s709_s17   ;;  %s499_s19 = sadd.s32 4294967294, %s709_s17   ;;  %s709_s17 = sphi %s744_s17, %s16_s17   ;;  %s705_s16 = sphi %s742_s16, %s920_s16   ;;  %s701_s15 = sphi %s740_s15, %s919_s15   ;;  %s697_s14 = sphi %s738_s14, %s918_s14   ;;  %s693_s13 = sphi %s736_s13, %s917_s13   ;;  %s689_s12 = sphi %s734_s12, %s916_s12  }
   0x5   : > { %s28_s20 = sadd.s32 1, %s705_s16  ;;  %s107_s21 = sadd.s32 1, %s697_s14 }
   0x6   : > { %p30_p0 = scmp.ge.s32.totalorder %s28_s20, 2  ;;  %p117_p1 = scmp.ne.s32.totalorder %s697_s14, %s693_s13 }
   0x7   : > { %p118_p2 = scmp.eq.s32.totalorder %s498_s18, 1  ;;  %p123_p3 = scmp.ne.s32.totalorder %s693_s13, %s689_s12 }
   0x8   : > { %s922_s20 = smov (%p30_p0, %s28_s20), 0  ;;  %p124_p5 = scmp.eq.s32.totalorder %s499_s19, 1 }
   0x9   : > { %p774_p4 = por %p118_p2, %p117_p1  ;;  %s102_s23 = ssub.s32 %s705_s16, %s922_s20 }
   0xa   : > { %p502_p6 = scmp.ge.s32.totalorder %s709_s17, 1  ;;  %p105_p7 = scmp.eq.s32.totalorder %s102_s23, 0 }
   0xb   : > { %p781_p8 = por %p124_p5, %p123_p3  ;;  %p159_p9 = scmp.lt.s32.totalorder %s709_s17, 3 }
   0xc   : > { %s787_s25 = scalar_select %p105_p7, %s697_s14, %s107_s21  }
   0xd   : > { %p160_p10 = pnand %p502_p6, %p159_p9 }
   0xe   : > { %p186_p11 = scmp.lt.s32.totalorder (!%p160_p10), %s701_s15, 1  ;;  %s183_s6 = sand.u32 (!%p160_p10), 1, %s693_s13  }
   0xf   : > { %163 = sbr.rel (%p160_p10) target bundleno = 202 (0xca), region = 32  ;;  %s651_s29 = scalar_lea.hbm (!%p160_p10), %s913_s3, 192 }
  0x10   : > { %s567_s7 = smul.u32 (!%p160_p10), 96, %s183_s6 }
  0x12   : > { %s857_s8 = scalar_lea.vmem (!%p160_p10), [#allocation2], %s567_s7 }
  0x13   : > { %s417_s19 = sshll.u32 (!%p160_p10), %s857_s8, 4  ;;  %s418_s19 = int_to_ptr.vmem [resolvable:$true] %s417_s19 }
  0x14   : > { %v215_v0 = vld [vmem:[%s912_s2 + $0x10] sm:$0xff]  ;;  %v213_v1 = vld [vmem:[%s912_s2] sm:$0xff]  ;;  %v711_v2 = vmov 0   ;;  %s187_s30 = scalar_select %p186_p11, %s701_s15, 1  ;;  %v216_v5 = vld [vmem:[%s912_s2 + $0x18] sm:$0xff]  ;;  %vm333_vm0 = vcmask 392192  }
  0x15   : > { %629 = vset.pattern.permute.xlu1 %v711_v2  ;;  %628 = vset.pattern.permute.xlu0 %v711_v2  ;;  %v217_v3 = vld [vmem:[%s912_s2 + $0x20] sm:$0xff]  ;;  %v214_v6 = vld [vmem:[%s912_s2 + $0x8] sm:$0xff]  ;;  %v220_v12 = vld [vmem:[%s912_s2 + $0x38] sm:$0xff] }
  0x16   : > { %237 = vperm.xlu1 %629, %v215_v0   ;;  %227 = vperm.xlu0 %628, %v213_v1   ;;  %s568_s4 = smul.u32 24, %s187_s30  ;;  %v218_v8 = vld [vmem:[%s912_s2 + $0x28] sm:$0xff]  ;;  %v549_v10 = vld [vmem:[%s911_s1] sm:$0xff]  ;;  %v219_v13 = vld [vmem:[%s912_s2 + $0x30] sm:$0xff] }
  0x17   : > { %630 = vset.pattern.permute.xlu2 %v711_v2  ;;  %v550_v11 = vld [vmem:[%s911_s1 + $0x8] sm:$0xff]  ;;  %v552_v14 = vld [vmem:[%s911_s1 + $0x18] sm:$0xff]  ;;  %v221_v16 = vld [vmem:[%s912_s2 + $0x40] sm:$0xff] }
  0x18   : > { %s193_s9 = scalar_lea.vmem %s910_s0, %s568_s4  ;;  %247 = vperm.xlu2 %630, %v217_v3   ;;  %v554_v15 = vld [vmem:[%s911_s1 + $0x28] sm:$0xff]  ;;  %v223_v17 = vld [vmem:[%s912_s2 + $0x50] sm:$0xff]  ;;  %v224_v19 = vld [vmem:[%s912_s2 + $0x58] sm:$0xff] }
  0x19   : > { %v557_v4 = vld [vmem:[%s193_s9 + $0x10] sm:$0xff]  ;;  %v556_v7 = vld [vmem:[%s193_s9 + $0x8] sm:$0xff]  ;;  %v555_v9 = vld [vmem:[%s193_s9] sm:$0xff]  ;;  %s569_s9 = smul.u32 96, %s701_s15  ;;  %s404_s15 = scalar_lea.sflag [#allocation3], %s183_s6 }
  0x1a   : > { %357 = vmatpush.bf16.msra.mxu0 %v557_v4  ;;  %558 = vmatpush.bf16.msra.mxu1 %v557_v4  ;;  %v222_v18 = vld [vmem:[%s912_s2 + $0x48] sm:$0xff]  ;;  %v551_v20 = vld [vmem:[%s911_s1 + $0x10] sm:$0xff]  ;;  %v553_v21 = vld [vmem:[%s911_s1 + $0x20] sm:$0xff] }
  0x1b   : > { %559 = vmatpush.bf16.msra.mxu2 %v557_v4  ;;  %560 = vmatpush.bf16.msra.mxu3 %v557_v4  ;;  %s416_s18 = scalar_lea.hbm %s913_s3, %s569_s9 }
  0x1c   : > { %s419_s21 = sshll.u32 %s416_s18, 4  ;;  %s420_s21 = int_to_ptr.hbm [resolvable:$true] %s419_s21 }
  0x1d   : > { %s645_s23 = sshra.s32 %s420_s21, 4  ;;  %s646_s23 = int_to_ptr.hbm [resolvable:$true] %s645_s23 }
  0x1e   : > { %242 = vperm.xlu1 %629, %v216_v5   ;;  %232 = vperm.xlu0 %628, %v214_v6   ;;  %s647_s26 = scalar_lea.hbm %s646_s23, 96  ;;  %p652_p1 = scmp.lt.s32.totalorder %s646_s23, %s913_s3 }
  0x1f   : > { %358 = vmatpush.bf16.msra.mxu0 %v556_v7  ;;  %561 = vmatpush.bf16.msra.mxu1 %v556_v7  ;;  %p648_p12 = scmp.ne.s32.totalorder %s646_s23, %s647_s26  ;;  %p653_p2 = scmp.lt.s32.totalorder %s651_s29, %s647_s26 }
  0x20   : > { %562 = vmatpush.bf16.msra.mxu2 %v556_v7  ;;  %563 = vmatpush.bf16.msra.mxu3 %v556_v7 }
  0x21   : > { %252 = vperm.xlu2 %630, %v218_v8   ;;  %p649_p13 = pnand %p648_p12, %p774_p4  ;;  %p654_p3 = por %p653_p2, %p652_p1 }
  0x23   : > { %359 = vmatpush.bf16.msra.mxu0 %v555_v9  ;;  %564 = vmatpush.bf16.msra.mxu1 %v555_v9  ;;  %p650_p0 = pneg %p649_p13 }
  0x24   : > { %565 = vmatpush.bf16.msra.mxu2 %v555_v9  ;;  %566 = vmatpush.bf16.msra.mxu3 %v555_v9 }
  0x25   : > { %p655_p5 = pnand %p654_p3, %p650_p0 }
  0x26   : > { %262 = vperm.xlu1 %629, %v220_v12   ;;  %257 = vperm.xlu0 %628, %v219_v13  }
  0x27   : > { %540 = vmatmul.msk.bf16.vlgmr.msra.gmra.mxu0 %vm333_vm0, %v549_v10  ;;  %541 = vmatmul.msk.bf16.vlgmr.msra.gmra.mxu1 %vm333_vm0, %v550_v11 }
  0x28   : > { %543 = vmatmul.msk.bf16.vlgmr.msra.gmra.mxu2 %vm333_vm0, %v552_v14  ;;  %545 = vmatmul.msk.bf16.vlgmr.msra.gmra.mxu3 %vm333_vm0, %v554_v15 }
  0x29   : > { %267 = vperm.xlu2 %630, %v221_v16  }
  0x2e   : > { %277 = vperm.xlu1 %629, %v223_v17   ;;  %272 = vperm.xlu0 %628, %v222_v18  }
  0x31   : > { %282 = vperm.xlu2 %630, %v224_v19  }
  0x37   : > { %542 = vmatmul.msk.bf16.gmra.mxu1 %vm333_vm0, %v551_v20 }
  0x38   : > { %544 = vmatmul.msk.bf16.gmra.mxu2 %vm333_vm0, %v553_v21 }
  0x72   : > { %v248_v23 = vpop.permute.xlu2 %247 }
  0x7b   : > { %v253_v26 = vpop.permute.xlu2 %252 }
  0x83   : > { %v268_v33 = vpop.permute.xlu2 %267 }
  0x88   : > { %v238_v22 = vpop.permute.xlu1 %237  ;;  %v228_v25 = vpop.permute.xlu0 %227 }
  0x8b   : > { %v283_v44 = vpop.permute.xlu2 %282 }
  0x90   : > { %v243_v24 = vpop.permute.xlu1 %242  ;;  %v233_v28 = vpop.permute.xlu0 %232 }
  0x98   : > { %v263_v27 = vpop.permute.xlu1 %262  ;;  %v258_v35 = vpop.permute.xlu0 %257 }
  0xa0   : > { %v278_v34 = vpop.permute.xlu1 %277  ;;  %v273_v55 = vpop.permute.xlu0 %272 }
  0xa4   : > { %v361_v29 = vpop.f32.mrf.mxu0  ;;  %v366_v30 = vpop.f32.mrf.mxu1 }
  0xa5   : > { %v362_v31 = vadd.f32 %v361_v29, %v228_v25  ;;  %v367_v32 = vadd.f32 %v366_v30, %v238_v22 }
  0xa7   : > { %391 = vst [vmem:[%s857_s8] sm:$0xff] %v362_v31 }
  0xa8   : > { %393 = vst [vmem:[%s857_s8 + $0x10] sm:$0xff] %v367_v32 }
  0xab   : > { %v376_v36 = vpop.f32.mrf.mxu2  ;;  %v386_v37 = vpop.f32.mrf.mxu3 }
  0xac   : > { %v377_v38 = vadd.f32 %v376_v36, %v258_v35  ;;  %v387_v39 = vadd.f32 %v386_v37, %v278_v34  ;;  %v363_v40 = vpop.f32.mrf.mxu0  ;;  %v368_v41 = vpop.f32.mrf.mxu1 }
  0xad   : > { %v364_v42 = vadd.f32 %v363_v40, %v233_v28  ;;  %v369_v43 = vadd.f32 %v368_v41, %v243_v24 }
  0xae   : > { %397 = vst [vmem:[%s857_s8 + $0x30] sm:$0xff] %v377_v38 }
  0xaf   : > { %401 = vst [vmem:[%s857_s8 + $0x50] sm:$0xff] %v387_v39 }
  0xb0   : > { %392 = vst [vmem:[%s857_s8 + $0x8] sm:$0xff] %v364_v42 }
  0xb1   : > { %394 = vst [vmem:[%s857_s8 + $0x18] sm:$0xff] %v369_v43 }
  0xb3   : > { %v378_v45 = vpop.f32.mrf.mxu2  ;;  %v388_v46 = vpop.f32.mrf.mxu3 }
  0xb4   : > { %v379_v47 = vadd.f32 %v378_v45, %v263_v27  ;;  %v389_v48 = vadd.f32 %v388_v46, %v283_v44  ;;  %v371_v49 = vpop.f32.mrf.mxu1 }
  0xb5   : > { %v372_v50 = vadd.f32 %v371_v49, %v248_v23 }
  0xb6   : > { %398 = vst [vmem:[%s857_s8 + $0x38] sm:$0xff] %v379_v47 }
  0xb7   : > { %402 = vst [vmem:[%s857_s8 + $0x58] sm:$0xff] %v389_v48 }
  0xb8   : > { %395 = vst [vmem:[%s857_s8 + $0x20] sm:$0xff] %v372_v50 }
  0xbb   : > { %v381_v51 = vpop.f32.mrf.mxu2 }
  0xbc   : > { %v382_v52 = vadd.f32 %v381_v51, %v268_v33  ;;  %v373_v53 = vpop.f32.mrf.mxu1 }
  0xbd   : > { %v374_v54 = vadd.f32 %v373_v53, %v253_v26 }
  0xbe   : > { %399 = vst [vmem:[%s857_s8 + $0x40] sm:$0xff] %v382_v52 }
  0xbf   : > { %396 = vst [vmem:[%s857_s8 + $0x28] sm:$0xff] %v374_v54 }
  0xc3   : > { %v383_v56 = vpop.f32.mrf.mxu2 }
  0xc4   : > { %v384_v57 = vadd.f32 %v383_v56, %v273_v55 }
  0xc6   : > { %400 = vst [vmem:[%s857_s8 + $0x48] sm:$0xff] %v384_v57 }
  0xc7   : > { %658 = shalt.err (!%p655_p5)
}
  0xc8   : > { %s712_s5 = smov 128   ;;  %s713_s6 = smov 8  }
  0xc9   : > { %570 = dma.vmem_to_hbm [thread:$0]  (%p774_p4), %s418_s19, 1536, %s420_s21, %s404_s15, %s712_s5, %s712_s5, %s713_s6  }
  0xca PF: > { %p576_p6 = scmp.ge.s32.totalorder %s709_s17, 2  ;;  %s434_s7 = sand.u32 1, %s689_s12  }
  0xcb   : > { %s435_s8 = scalar_lea.sflag [#allocation3], %s434_s7 }
  0xcc   : > { %p573_p7 = pnand %p576_p6, %p781_p8 }
  0xce   : > { %p574_p9 = pneg %p573_p7 }
  0xd0   : > { %684 = dma.done.wait (%p574_p9), %s435_s8, 1536  }
  0xd1   : > { %686 = vsyncadd (%p574_p9), %s435_s8, 4294965760  ;;  %s16_s17 = sadd.s32 1, %s709_s17   ;;  %s916_s12 = smov %s693_s13 }
  0xd2   : > { %p13_p10 = scmp.ge.s32.totalorder %s16_s17, 4   ;;  %s917_s13 = smov %s697_s14 }
  0xd3   : > { %s918_s14 = smov %s787_s25  ;;  %s919_s15 = smov %s705_s16 }
  0xd4   : > { %s920_s16 = smov %s922_s20  ;;  %15 = sbr.rel (!%p13_p10) target bundleno = 4 (0x4), region = 67 }
  0xd9   :  { %441 = vsyncpa [#allocation3], 1 }
  0xda   :  { %443 = vsyncpa [#allocation3 + $0x1], 1 }

</bundles_post_ra>
